<compile_context>
chip_gen: v7x
topology: tpu7x:2x2x1
jax: 0.10.0
libtpu: 0.0.40
codegen_flags: <defaults>
</compile_context>

<pallas_src>
import functools

import jax
import jax.numpy as jnp
from jax.experimental import pallas as pl
from jax.experimental.pallas import tpu as pltpu


def _round_up(x, m):
    return ((x + m - 1) // m) * m


def _vmem_bytes(tb, in_dim, z_dim):
    """Estimated VMEM working set (double-buffered) in bytes, f32 everywhere."""
    f32 = 4
    # Per-grid-step streamed tiles: x, noise, mu, var, z.
    per_step = tb * (in_dim + z_dim + 3 * z_dim) * f32
    # Fused weights + bias (revisited every step, but allocated double-buffered).
    weights = (in_dim * 2 * z_dim + 2 * z_dim) * f32
    return 2 * (per_step + weights)


def gaussian_kernel(x_ref, w_ref, b_ref, noise_ref, mu_ref, var_ref, z_ref, *, z_dim):
    x = x_ref[...]                                                  # (tb, in_dim)

    # Fused linear heads: one MXU matmul for both mu and pre-softplus var.
    h = jnp.dot(x, w_ref[...], preferred_element_type=jnp.float32)  # (tb, 2*z_dim)
    h = h + b_ref[...]                                               # + (1, 2*z_dim)

    mu = h[:, :z_dim]
    v = h[:, z_dim:]

    # Numerically stable softplus: one exp + one log1p per element.
    var = jnp.maximum(v, 0.0) + jnp.log1p(jnp.exp(-jnp.abs(v)))

    # Reparameterize: z = mu + noise * sqrt(var + 1e-10)
    std = jnp.sqrt(var + 1e-10)
    z = mu + noise_ref[...] * std

    mu_ref[...] = mu
    var_ref[...] = var
    z_ref[...] = z


def gaussian_forward(x, w_mu, b_mu, w_var, b_var, noise, *, max_tb=1024):
    """x: (B, in_dim); w_*: (in_dim, z_dim); b_*: (z_dim,); noise: (B, z_dim).

    Returns (mu, var, z), each (B, z_dim) float32.
    """
    B, in_dim = x.shape
    z_dim = w_mu.shape[1]

    # --- tile choice: biggest tile that fits the VMEM budget -----------------
    # Single grid step whenever B fits (no point splitting on single-TC chips);
    # stay >= 512 rows unless VMEM forces smaller.
    VMEM_WORKSET_BUDGET = 44 << 20     # conservative: fits v7x's 64 MiB/TC
    tb = min(_round_up(max(B, 8), 8), max_tb)
    while tb > 8 and _vmem_bytes(tb, in_dim, z_dim) > VMEM_WORKSET_BUDGET:
        tb = max(8, _round_up(tb // 2, 8))

    grid = (pl.cdiv(B, tb),)           # ragged last block handled by Pallas masking

    # --- fuse the two heads on the wrapper side ------------------------------
    w_fused = jnp.concatenate([w_mu, w_var], axis=1)            # (in_dim, 2*z_dim)
    b_fused = jnp.concatenate([b_mu, b_var]).reshape(1, 2 * z_dim)

    row_x = pl.BlockSpec((tb, in_dim), lambda i: (i, 0))
    full_w = pl.BlockSpec((in_dim, 2 * z_dim), lambda i: (0, 0))
    full_b = pl.BlockSpec((1, 2 * z_dim), lambda i: (0, 0))
    row_noise = pl.BlockSpec((tb, z_dim), lambda i: (i, 0))
    row_out = pl.BlockSpec((tb, z_dim), lambda i: (i, 0))

    need = _vmem_bytes(tb, in_dim, z_dim)
    vmem_limit = int(min(max(need + (4 << 20), 32 << 20), 48 << 20))

    out_shape = (
        jax.ShapeDtypeStruct((B, z_dim), jnp.float32),   # mu
        jax.ShapeDtypeStruct((B, z_dim), jnp.float32),   # var
        jax.ShapeDtypeStruct((B, z_dim), jnp.float32),   # z
    )

    mu, var, z = pl.pallas_call(
        functools.partial(gaussian_kernel, z_dim=z_dim),
        out_shape=out_shape,
        grid_spec=pltpu.PrefetchScalarGridSpec(
            num_scalar_prefetch=0,
            grid=grid,
            in_specs=[row_x, full_w, full_b, row_noise],
            out_specs=[row_out, row_out, row_out],
        ),
        compiler_params=pltpu.CompilerParams(
            dimension_semantics=("parallel",),
            vmem_limit_bytes=vmem_limit,
        ),
    )(x, w_fused, b_fused, noise)

    return mu, var, z


if __name__ == "__main__":
    B, in_dim, z_dim = 16, 32, 16

    key = jax.random.PRNGKey(0)
    kx, kwm, kbm, kwv, kbv, kn = jax.random.split(key, 6)

    x = jax.random.normal(kx, (B, in_dim), dtype=jnp.float32)
    # nn.Linear(in_dim, z_dim): weight (z_dim, in_dim), bias (z_dim).
    # Weights stored pre-transposed to (in_dim, z_dim) for the kernel matmul.
    bound = 1.0 / jnp.sqrt(in_dim)
    w_mu = jax.random.uniform(kwm, (in_dim, z_dim), jnp.float32, -bound, bound)
    b_mu = jax.random.uniform(kbm, (z_dim,), jnp.float32, -bound, bound)
    w_var = jax.random.uniform(kwv, (in_dim, z_dim), jnp.float32, -bound, bound)
    b_var = jax.random.uniform(kbv, (z_dim,), jnp.float32, -bound, bound)
    # torch.randn_like(std) equivalent: standard normal noise generated host-side.
    noise = jax.random.normal(kn, (B, z_dim), dtype=jnp.float32)

    mu, var, z = gaussian_forward(x, w_mu, b_mu, w_var, b_var, noise)
    jax.block_until_ready((mu, var, z))

    # Reference check in plain JAX.
    mu_ref = x @ w_mu + b_mu
    var_ref = jax.nn.softplus(x @ w_var + b_var)
    z_ref = mu_ref + noise * jnp.sqrt(var_ref + 1e-10)
    assert jnp.allclose(mu, mu_ref, atol=1e-5)
    assert jnp.allclose(var, var_ref, atol=1e-5)
    assert jnp.allclose(z, z_ref, atol=1e-5)

    print("KERNEL_OK")
</pallas_src>

<mosaic_0001>
module attributes {stable_mosaic.version = 11 : i64} {
  func.func @gaussian_kernel(%arg0: i32, %arg1: memref<16x32xf32, #tpu.memory_space<vmem>>, %arg2: memref<32x32xf32, #tpu.memory_space<vmem>>, %arg3: memref<1x32xf32, #tpu.memory_space<vmem>>, %arg4: memref<16x16xf32, #tpu.memory_space<vmem>>, %arg5: memref<16x16xf32, #tpu.memory_space<vmem>>, %arg6: memref<16x16xf32, #tpu.memory_space<vmem>>, %arg7: memref<16x16xf32, #tpu.memory_space<vmem>>) attributes {dimension_semantics = [#tpu.dimension_semantics<parallel>], iteration_bounds = array<i64: 1>, scalar_prefetch = 0 : i64, scratch_operands = 0 : i64, tpu.core_type = #tpu.core_type<tc>, window_params = [{transform_indices = @transform_0, window_bounds = array<i64: 16, 32>}, {pipeline_mode = #tpu.pipeline_mode<synchronous>, transform_indices = @transform_1, window_bounds = array<i64: 32, 32>}, {pipeline_mode = #tpu.pipeline_mode<synchronous>, transform_indices = @transform_2, window_bounds = array<i64: 1, 32>}, {transform_indices = @transform_3, window_bounds = array<i64: 16, 16>}, {transform_indices = @transform_4, window_bounds = array<i64: 16, 16>}, {transform_indices = @transform_5, window_bounds = array<i64: 16, 16>}, {transform_indices = @transform_6, window_bounds = array<i64: 16, 16>}]} {
    %c0 = arith.constant 0 : index
    %c0_0 = arith.constant 0 : index
    %0 = vector.load %arg1[%c0, %c0_0] : memref<16x32xf32, #tpu.memory_space<vmem>>, vector<16x32xf32>
    %c0_1 = arith.constant 0 : index
    %c0_2 = arith.constant 0 : index
    %1 = vector.load %arg2[%c0_1, %c0_2] : memref<32x32xf32, #tpu.memory_space<vmem>>, vector<32x32xf32>
    %cst = arith.constant dense<0.000000e+00> : vector<16x32xf32>
    %2 = tpu.matmul %0, %1, %cst {dimension_numbers = #tpu.dot_dimension_numbers<[1], [0], [0], [1], [0, 0, 1, 1], [], []>} : vector<16x32xf32>, vector<32x32xf32>, vector<16x32xf32> -> vector<16x32xf32>
    %c0_3 = arith.constant 0 : index
    %c0_4 = arith.constant 0 : index
    %3 = vector.load %arg3[%c0_3, %c0_4] : memref<1x32xf32, #tpu.memory_space<vmem>>, vector<1x32xf32>
    %4 = vector.broadcast %3 : vector<1x32xf32> to vector<16x32xf32>
    %5 = arith.addf %2, %4 : vector<16x32xf32>
    %6 = vector.extract_strided_slice %5 {offsets = [0, 0], sizes = [16, 16], strides = [1, 1]} : vector<16x32xf32> to vector<16x16xf32>
    %7 = vector.extract_strided_slice %5 {offsets = [0, 16], sizes = [16, 16], strides = [1, 1]} : vector<16x32xf32> to vector<16x16xf32>
    %cst_5 = arith.constant 0.000000e+00 : f32
    %8 = vector.broadcast %cst_5 : f32 to vector<16x16xf32>
    %9 = arith.maximumf %7, %8 : vector<16x16xf32>
    %10 = math.absf %7 : vector<16x16xf32>
    %cst_6 = arith.constant 0.000000e+00 : f32
    %11 = vector.broadcast %cst_6 : f32 to vector<16x16xf32>
    %12 = arith.subf %11, %10 : vector<16x16xf32>
    %13 = math.exp %12 : vector<16x16xf32>
    %14 = math.log1p %13 : vector<16x16xf32>
    %15 = arith.addf %9, %14 : vector<16x16xf32>
    %cst_7 = arith.constant 1.000000e-10 : f32
    %16 = vector.broadcast %cst_7 : f32 to vector<16x16xf32>
    %17 = arith.addf %15, %16 : vector<16x16xf32>
    %18 = math.sqrt %17 : vector<16x16xf32>
    %c0_8 = arith.constant 0 : index
    %c0_9 = arith.constant 0 : index
    %19 = vector.load %arg4[%c0_8, %c0_9] : memref<16x16xf32, #tpu.memory_space<vmem>>, vector<16x16xf32>
    %20 = arith.mulf %19, %18 : vector<16x16xf32>
    %21 = arith.addf %6, %20 : vector<16x16xf32>
    %c0_10 = arith.constant 0 : index
    %c0_11 = arith.constant 0 : index
    %22 = vector.load %arg5[%c0_10, %c0_11] : memref<16x16xf32, #tpu.memory_space<vmem>>, vector<16x16xf32>
    tpu.vector_store %arg5[%c0_10, %c0_11], %6 {strides = array<i32>} : memref<16x16xf32, #tpu.memory_space<vmem>>, vector<16x16xf32>,
    %c0_12 = arith.constant 0 : index
    %c0_13 = arith.constant 0 : index
    %23 = vector.load %arg6[%c0_12, %c0_13] : memref<16x16xf32, #tpu.memory_space<vmem>>, vector<16x16xf32>
    tpu.vector_store %arg6[%c0_12, %c0_13], %15 {strides = array<i32>} : memref<16x16xf32, #tpu.memory_space<vmem>>, vector<16x16xf32>,
    %c0_14 = arith.constant 0 : index
    %c0_15 = arith.constant 0 : index
    %24 = vector.load %arg7[%c0_14, %c0_15] : memref<16x16xf32, #tpu.memory_space<vmem>>, vector<16x16xf32>
    tpu.vector_store %arg7[%c0_14, %c0_15], %21 {strides = array<i32>} : memref<16x16xf32, #tpu.memory_space<vmem>>, vector<16x16xf32>,
    return
  }
  func.func @transform_0(%arg0: i32) -> (i32, i32) {
    %c0_i32 = arith.constant 0 : i32
    %c0_i32_0 = arith.constant 0 : i32
    return %arg0, %c0_i32 : i32, i32
  }
  func.func @transform_1(%arg0: i32) -> (i32, i32) {
    %c0_i32 = arith.constant 0 : i32
    %c0_i32_0 = arith.constant 0 : i32
    %c0_i32_1 = arith.constant 0 : i32
    return %c0_i32, %c0_i32_0 : i32, i32
  }
  func.func @transform_2(%arg0: i32) -> (i32, i32) {
    %c0_i32 = arith.constant 0 : i32
    %c0_i32_0 = arith.constant 0 : i32
    %c0_i32_1 = arith.constant 0 : i32
    return %c0_i32, %c0_i32_0 : i32, i32
  }
  func.func @transform_3(%arg0: i32) -> (i32, i32) {
    %c0_i32 = arith.constant 0 : i32
    %c0_i32_0 = arith.constant 0 : i32
    return %arg0, %c0_i32 : i32, i32
  }
  func.func @transform_4(%arg0: i32) -> (i32, i32) {
    %c0_i32 = arith.constant 0 : i32
    %c0_i32_0 = arith.constant 0 : i32
    return %arg0, %c0_i32 : i32, i32
  }
  func.func @transform_5(%arg0: i32) -> (i32, i32) {
    %c0_i32 = arith.constant 0 : i32
    %c0_i32_0 = arith.constant 0 : i32
    return %arg0, %c0_i32 : i32, i32
  }
  func.func @transform_6(%arg0: i32) -> (i32, i32) {
    %c0_i32 = arith.constant 0 : i32
    %c0_i32_0 = arith.constant 0 : i32
    return %arg0, %c0_i32 : i32, i32
  }
}

</mosaic_0001>

<bundles_post_ra>
// kernel: tpu_custom_call.1
= control target key start
LH: loop header
LB: loop body
LE: loop exit
PB: predicated region body
PF: predicated region fallthrough
CT: control target
= control target key end

     0   :  { %12 = vsyncpa [#allocation3], 0  ;;  %s637_s0 = inlined_call_operand.hbm [shape: f32[16,32], index: 0, kind: input, shape index: {}]   ;;  %s638_s1 = inlined_call_operand.hbm [shape: f32[32,32], index: 1, kind: input, shape index: {}]   ;;  %s639_s2 = inlined_call_operand.vmem [shape: f32[1,32], index: 2, kind: input, shape index: {}]   ;;  %s640_s3 = inlined_call_operand.hbm [shape: f32[16,16], index: 3, kind: input, shape index: {}]   ;;  %s641_s4 = inlined_call_operand.hbm [shape: f32[16,16], index: 4, kind: output, shape index: {0}]   ;;  %s642_s5 = inlined_call_operand.hbm [shape: f32[16,16], index: 5, kind: output, shape index: {1}]   ;;  %s643_s6 = inlined_call_operand.hbm [shape: f32[16,16], index: 6, kind: output, shape index: {2}]  }
   0x1   :  { %13 = vsyncpa [#allocation6], 0 }
   0x2   :  { %14 = vsyncpa [#allocation4], 0 }
   0x3   :  { %15 = vsyncpa [#allocation10], 0  ;;  %s471_s21 = smov [#allocation5]   ;;  %s472_s23 = smov [#allocation2]  }
   0x4   :  { %s33_s22 = sshll.u32 %s471_s21, 4  ;;  %s21_s24 = sshll.u32 %s472_s23, 4  ;;  %s34_s22 = int_to_ptr.vmem [resolvable:$true] %s33_s22  ;;  %s515_s24 = int_to_ptr.vmem [resolvable:$true] %s21_s24 }
   0x5   :  { %s331_s27 = scalar_lea.hbm %s638_s1, 512 }
   0x6   :  { %p332_p0 = scmp.ne.s32.totalorder %s638_s1, %s331_s27  ;;  %p335_p1 = scmp.lt.u32.totalorder %s331_s27, %s638_s1 }
   0x8   :  { %p337_p2 = pnand %p335_p1, %p332_p0 }
   0xa   :  { %340 = shalt.err (!%p337_p2)
}
   0xb   :  { %s341_s8 = scalar_lea.vmem %s34_s22, 512  ;;  %p346_p4 = scmp.lt.s32.totalorder %s34_s22, %s34_s22 }
   0xc   :  { %p342_p3 = scmp.ne.s32.totalorder %s34_s22, %s341_s8  ;;  %p347_p5 = scmp.lt.s32.totalorder %s341_s8, %s341_s8 }
   0xe   :  { %p348_p6 = por %p347_p5, %p346_p4 }
  0x10   :  { %p349_p7 = pnand %p348_p6, %p342_p3 }
  0x12   :  { %352 = shalt.err (!%p349_p7)
}
  0x13   :  { %s473_s9 = smov 128   ;;  %s474_s10 = smov 8  }
  0x14   :  { %39 = dma.hbm_to_vmem [thread:$0]  %s638_s1, 512, %s34_s22, [#allocation6], %s473_s9, %s473_s9, %s474_s10  }
  0x15   :  { %s353_s15 = scalar_lea.hbm %s637_s0, 256 }
  0x16   :  { %p354_p8 = scmp.ne.s32.totalorder %s637_s0, %s353_s15  ;;  %p357_p9 = scmp.lt.u32.totalorder %s353_s15, %s637_s0 }
  0x18   :  { %p359_p10 = pnand %p357_p9, %p354_p8 }
  0x1a   :  { %362 = shalt.err (!%p359_p10)
}
  0x1b   :  { %s363_s20 = scalar_lea.vmem %s515_s24, 256  ;;  %p368_p12 = scmp.lt.s32.totalorder %s515_s24, %s515_s24 }
  0x1c   :  { %p364_p11 = scmp.ne.s32.totalorder %s515_s24, %s363_s20  ;;  %p369_p13 = scmp.lt.s32.totalorder %s363_s20, %s363_s20 }
  0x1e   :  { %p370_p0 = por %p369_p13, %p368_p12 }
  0x20   :  { %p371_p1 = pnand %p370_p0, %p364_p11 }
  0x22   :  { %374 = shalt.err (!%p371_p1)
}
  0x23   :  { %27 = dma.hbm_to_vmem [thread:$0]  %s637_s0, 256, %s515_s24, [#allocation3], %s473_s9, %s473_s9, %s474_s10  }
  0x24   :  { %s475_s22 = smov [#allocation7]   ;;  %s375_s27 = scalar_lea.hbm %s640_s3, 256 }
  0x25   :  { %s47_s23 = sshll.u32 %s475_s22, 4  ;;  %p376_p2 = scmp.ne.s32.totalorder %s640_s3, %s375_s27  ;;  %s48_s23 = int_to_ptr.vmem [resolvable:$true] %s47_s23 }
  0x26   :  { %p379_p3 = scmp.lt.u32.totalorder %s375_s27, %s640_s3 }
  0x28   :  { %p381_p4 = pnand %p379_p3, %p376_p2 }
  0x2a   :  { %384 = shalt.err (!%p381_p4)
}
  0x2b   :  { %s385_s8 = scalar_lea.vmem %s48_s23, 256  ;;  %p390_p6 = scmp.lt.s32.totalorder %s48_s23, %s48_s23 }
  0x2c   :  { %p386_p5 = scmp.ne.s32.totalorder %s48_s23, %s385_s8  ;;  %p391_p7 = scmp.lt.s32.totalorder %s385_s8, %s385_s8 }
  0x2e   :  { %p392_p8 = por %p391_p7, %p390_p6 }
  0x30   :  { %p393_p9 = pnand %p392_p8, %p386_p5 }
  0x32   :  { %396 = shalt.err (!%p393_p9)
}
  0x33   :  { %53 = dma.hbm_to_vmem [thread:$0]  %s640_s3, 256, %s48_s23, [#allocation6], %s473_s9, %s473_s9, %s474_s10  }
  0x34   :  { %463 = dma.done.wait [#allocation3], 256  }
  0x35   :  { %464 = vsyncadd [#allocation3], 4294967040 }
  0x36   :  { %465 = dma.done.wait [#allocation6], 768  }
  0x37   :  { %466 = vsyncadd [#allocation6], 4294966528  ;;  %vm76_vm0 = vcmask 261120   ;;  %v65_v0 = vld [vmem:[#allocation5] sm:$0xff]  ;;  %v66_v1 = vld [vmem:[#allocation5 + $0x8] sm:$0xff]  ;;  %vm218_vm1 = vcmask 130048  }
  0x38   :  { %v67_v2 = vld [vmem:[#allocation5 + $0x10] sm:$0xff]  ;;  %v302_v3 = vpack.c.bf16 %v66_v1, %v65_v0  ;;  %v68_v4 = vld [vmem:[#allocation5 + $0x18] sm:$0xff]  ;;  %s477_s12 = smov [#allocation8]  }
  0x39   :  { %v63_v5 = vld [vmem:[#allocation2] sm:$0xff]  ;;  %v306_v6 = vpack.c.bf16 %v68_v4, %v67_v2  ;;  %v64_v7 = vld [vmem:[#allocation2 + $0x8] sm:$0xff]  ;;  %s238_s13 = sshll.u32 %s477_s12, 4  ;;  %s239_s13 = int_to_ptr.vmem [resolvable:$true] %s238_s13 }
  0x3a   :  { %299 = vmatprep.mubr.msk.f32.mxu0 %vm76_vm0, %v63_v5  ;;  %303 = vmatprep.subr.bf16.mxu0 %v302_v3  ;;  %v282_v8 = vld [vmem:[%s639_s2] ss:$0 sm:$0xff]  ;;  %s476_s2 = smov 112   ;;  %s397_s14 = scalar_lea.vmem %s239_s13, 256 }
  0x3b   :  { %305 = vmatpush3.bf16.msra.mxu0 %v302_v3  ;;  %p398_p10 = scmp.ne.s32.totalorder %s239_s13, %s397_s14  ;;  %p402_p11 = scmp.lt.s32.totalorder %s239_s13, %s239_s13 }
  0x3c   :  { %307 = vmatprep.subr.bf16.mxu0 %v306_v6  ;;  %p403_p12 = scmp.lt.s32.totalorder %s397_s14, %s397_s14 }
  0x3e   :  { %p404_p13 = por %p403_p12, %p402_p11 }
  0x3f   :  { %309 = vmatpush3.bf16.msra.mxu0 %v306_v6 }
  0x40   :  { %p405_p0 = pnand %p404_p13, %p398_p10 }
  0x42   :  { %300 = vmatmul.mubr.msk.f32.vlgmr.msra.gmra.mrb[0].mxu0 %vm76_vm0, %v64_v7 }
 0x115   :  { %v301_v9 = vpop.f32.mrb[0].mxu0 }
 0x116   :  { %v570_v10 = vadd.f32 %v301_v9, %v282_v8  ;;  %v149_v11 = vpop.f32.mrb[1].mxu0 }
 0x117   :  { %v572_v12 = vadd.f32 %v282_v8, %v149_v11 }
 0x118   :  { %v161_v13 = vand.u32 2147483647, %v570_v10  ;;  %220 = vst.msk [vmem:[#allocation8 + $0x8] sm:$0xff] %vm218_vm1, %v570_v10  ;;  %v159_v35 = vmax.f32 %v570_v10, 0.0 }
 0x119   :  { %v160_v14 = vand.u32 2147483647, %v572_v12  ;;  %219 = vst.msk [vmem:[#allocation8] sm:$0xff] %vm218_vm1, %v572_v12  ;;  %v158_v36 = vmax.f32 %v572_v12, 0.0 }
 0x11a   :  { %v163_v15 = vsub.f32 0.0, %v161_v13 }
 0x11b   :  { %v162_v16 = vsub.f32 0.0, %v160_v14 }
 0x11c   :  { %v166_v17 = vmul.f32 1.442695, %v163_v15 }
 0x11d   :  { %v164_v18 = vmul.f32 1.442695, %v162_v16 }
 0x11e   :  { %319 = vpow2.f32 %v166_v17 }
 0x11f   :  { %321 = vpow2.f32 %v164_v18 }
 0x128   :  { %v320_v19 = vpop.eup %319 }
 0x129   :  { %v322_v20 = vpop.eup %321  ;;  %v177_v21 = vadd.f32 1.0, %v320_v19  ;;  %v180_v23 = vmul.f32 -0.5, %v320_v19  ;;  %v183_v27 = vand.u32 2147483647, %v320_v19 }
 0x12a   :  { %v168_v22 = vadd.f32 1.0, %v322_v20  ;;  %v171_v24 = vmul.f32 -0.5, %v322_v20  ;;  %v174_v28 = vand.u32 2147483647, %v322_v20 }
 0x12b   :  { %323 = vlog2.f32 %v177_v21  ;;  %v181_v25 = vadd.f32 1.0, %v180_v23  ;;  %vm184_vm2 = vcmp.lt.f32.partialorder %v183_v27, 0.0004427343 }
 0x12c   :  { %325 = vlog2.f32 %v168_v22  ;;  %v172_v26 = vadd.f32 1.0, %v171_v24  ;;  %vm175_vm3 = vcmp.lt.f32.partialorder %v174_v28, 0.0004427343 }
 0x12d   :  { %v182_v32 = vmul.f32 %v320_v19, %v181_v25 }
 0x12e   :  { %v173_v34 = vmul.f32 %v322_v20, %v172_v26 }
 0x135   :  { %v324_v29 = vpop.eup %323 }
 0x136   :  { %v326_v30 = vpop.eup %325  ;;  %v179_v31 = vmul.f32 0.6931472, %v324_v29 }
 0x137   :  { %v170_v33 = vmul.f32 0.6931472, %v326_v30 }
 0x138   :  { %v185_v37 = vsel %vm184_vm2, %v182_v32, %v179_v31 }
 0x139   :  { %v176_v38 = vsel %vm175_vm3, %v173_v34, %v170_v33  ;;  %v187_v39 = vadd.f32 %v185_v37, %v159_v35 }
 0x13a   :  { %v186_v40 = vadd.f32 %v176_v38, %v158_v36 }
 0x13b   :  { %v189_v41 = vadd.f32 1e-10, %v187_v39 }
 0x13c   :  { %223 = vrot.lane.b32.xlu1 %v186_v40, %s476_s2  ;;  %v188_v42 = vadd.f32 1e-10, %v186_v40 }
 0x13d   :  { %327 = vrsqrt.f32 %v189_v41 }
 0x13e   :  { %329 = vrsqrt.f32 %v188_v42 }
 0x140   :  { %225 = vrot.lane.b32.xlu1 %v187_v39, %s476_s2 }
 0x147   :  { %v328_v43 = vpop.eup %327 }
 0x148   :  { %v330_v44 = vpop.eup %329  ;;  %v198_v46 = vmul.f32 %v328_v43, %v189_v41 }
 0x149   :  { %v191_v45 = vmul.f32 %v330_v44, %v188_v42 }
 0x14a   :  { %408 = shalt.err (!%p405_p0)
}
 0x14b   :  { %s409_s17 = scalar_lea.hbm %s641_s4, 256 }
 0x14c   :  { %p410_p1 = scmp.ne.s32.totalorder %s641_s4, %s409_s17  ;;  %p413_p2 = scmp.lt.u32.totalorder %s409_s17, %s641_s4 }
 0x14e   :  { %p415_p3 = pnand %p413_p2, %p410_p1 }
 0x150   :  { %418 = shalt.err (!%p415_p3)
}
 0x151   :  { %244 = dma.vmem_to_hbm [thread:$0]  %s239_s13, 256, %s641_s4, [#allocation4], %s473_s9, %s473_s9, %s474_s10   ;;  %vm192_vm4 = vcmp.eq.f32.partialorder %v188_v42, inf  ;;  %v195_v47 = vand.u32 2147483648, %v188_v42  ;;  %vm194_vm5 = vcmp.eq.f32.partialorder %v188_v42, 0.0  ;;  %vm199_vm6 = vcmp.eq.f32.partialorder %v189_v41, inf }
 0x152   :  { %v193_v48 = vsel %vm192_vm4, %v188_v42, %v191_v45  ;;  %v200_v50 = vsel %vm199_vm6, %v189_v41, %v198_v46  ;;  %v202_v51 = vand.u32 2147483648, %v189_v41  ;;  %vm201_vm7 = vcmp.eq.f32.partialorder %v189_v41, 0.0  ;;  %s478_s23 = smov [#allocation9]  }
 0x153   :  { %v196_v49 = vsel %vm194_vm5, %v195_v47, %v193_v48  ;;  %s250_s25 = sshll.u32 %s478_s23, 4  ;;  %s251_s25 = int_to_ptr.vmem [resolvable:$true] %s250_s25 }
 0x154   :  { %208 = vrot.lane.b32.xlu0 %v196_v49, %s476_s2  ;;  %v203_v52 = vsel %vm201_vm7, %v202_v51, %v200_v50  ;;  %s419_s4 = scalar_lea.vmem %s251_s25, 256  ;;  %p424_p5 = scmp.lt.s32.totalorder %s251_s25, %s251_s25 }
 0x155   :  { %p420_p4 = scmp.ne.s32.totalorder %s251_s25, %s419_s4  ;;  %p425_p6 = scmp.lt.s32.totalorder %s419_s4, %s419_s4 }
 0x157   :  { %p426_p7 = por %p425_p6, %p424_p5 }
 0x158   :  { %210 = vrot.lane.b32.xlu0 %v203_v52, %s476_s2 }
 0x159   :  { %p427_p8 = pnand %p426_p7, %p420_p4 }
 0x1ae   :  { %v224_v53 = vpop.permute.xlu1 %223 }
 0x1af   :  { %229 = vst.msk [vmem:[#allocation9] sm:$0xff] %vm218_vm1, %v224_v53 }
 0x1b2   :  { %v226_v54 = vpop.permute.xlu1 %225 }
 0x1b3   :  { %230 = vst.msk [vmem:[#allocation9 + $0x8] sm:$0xff] %vm218_vm1, %v226_v54 }
 0x1b4   :  { %430 = shalt.err (!%p427_p8)
}
 0x1b5   :  { %s431_s28 = scalar_lea.hbm %s642_s5, 256 }
 0x1b6   :  { %p432_p9 = scmp.ne.s32.totalorder %s642_s5, %s431_s28  ;;  %p435_p10 = scmp.lt.u32.totalorder %s431_s28, %s642_s5 }
 0x1b8   :  { %p437_p11 = pnand %p435_p10, %p432_p9 }
 0x1ba   :  { %440 = shalt.err (!%p437_p11)
}
 0x1bb   :  { %256 = dma.vmem_to_hbm [thread:$0]  %s251_s25, 256, %s642_s5, [#allocation10], %s473_s9, %s473_s9, %s474_s10   ;;  %v204_v55 = vld [vmem:[#allocation7] sm:$0xff]  ;;  %v205_v58 = vld [vmem:[#allocation7 + $0x8] sm:$0xff] }
 0x1bc   :  { %s479_s3 = smov [#allocation11]  }
 0x1bd   :  { %s262_s11 = sshll.u32 %s479_s3, 4  ;;  %s263_s11 = int_to_ptr.vmem [resolvable:$true] %s262_s11 }
 0x1be   :  { %s441_s2 = scalar_lea.vmem %s263_s11, 256  ;;  %p446_p13 = scmp.lt.s32.totalorder %s263_s11, %s263_s11 }
 0x1bf   :  { %p442_p12 = scmp.ne.s32.totalorder %s263_s11, %s441_s2  ;;  %p447_p0 = scmp.lt.s32.totalorder %s441_s2, %s441_s2 }
 0x1c1   :  { %p448_p1 = por %p447_p0, %p446_p13 }
 0x1c3   :  { %p449_p2 = pnand %p448_p1, %p442_p12 }
 0x1c6   :  { %v209_v56 = vpop.permute.xlu0 %208 }
 0x1c7   :  { %v214_v57 = vmul.f32 %v209_v56, %v204_v55 }
 0x1c9   :  { %v216_v59 = vadd.f32 %v214_v57, %v572_v12 }
 0x1ca   :  { %v211_v60 = vpop.permute.xlu0 %210 }
 0x1cb   :  { %231 = vst.msk [vmem:[#allocation11] sm:$0xff] %vm218_vm1, %v216_v59  ;;  %v215_v61 = vmul.f32 %v211_v60, %v205_v58 }
 0x1cd   :  { %v217_v62 = vadd.f32 %v215_v61, %v570_v10 }
 0x1cf   :  { %232 = vst.msk [vmem:[#allocation11 + $0x8] sm:$0xff] %vm218_vm1, %v217_v62 }
 0x1d0   :  { %452 = shalt.err (!%p449_p2)
}
 0x1d1   :  { %s453_s13 = scalar_lea.hbm %s643_s6, 256 }
 0x1d2   :  { %p454_p3 = scmp.ne.s32.totalorder %s643_s6, %s453_s13  ;;  %p457_p4 = scmp.lt.u32.totalorder %s453_s13, %s643_s6 }
 0x1d4   :  { %p459_p5 = pnand %p457_p4, %p454_p3 }
 0x1d6   :  { %462 = shalt.err (!%p459_p5)
}
 0x1d7   :  { %268 = dma.vmem_to_hbm [thread:$0]  %s263_s11, 256, %s643_s6, [#allocation10], %s473_s9, %s473_s9, %s474_s10  }
 0x1d8   :  { %467 = dma.done.wait [#allocation4], 256  }
 0x1d9   :  { %468 = vsyncadd [#allocation4], 4294967040 }
 0x1da   :  { %469 = dma.done.wait [#allocation10], 512  }
 0x1db   :  { %470 = vsyncadd [#allocation10], 4294966784 }
 0x1dc   :  { %278 = vsyncpa [#allocation3], 1 }
 0x1dd   :  { %279 = vsyncpa [#allocation6], 1 }
 0x1de   :  { %280 = vsyncpa [#allocation4], 1 }
 0x1df   :  { %281 = vsyncpa [#allocation10], 1 }

</bundles_post_ra>
